<compile_context>
chip_gen: v6e
topology: v6e:2x2x1
jax: 0.10.0
libtpu: 0.0.40
codegen_flags: <defaults>
</compile_context>

<pallas_src>
import functools

import jax
import jax.numpy as jnp
from jax.experimental import pallas as pl
from jax.experimental.pallas import tpu as pltpu


_TARGET_BLOCK_BYTES = 1 << 20      # ~1 MiB x-blocks: ~85% of HBM roofline in sweeps
_MIN_VMEM_LIMIT = 16 << 20
_MAX_VMEM_LIMIT = 48 << 20         # stay well inside v7x's 64 MiB physical VMEM


# ----------------------------------------------------------------------------
# Fused SE kernel: spatial mean -> fc1 -> ReLU -> fc2 -> sigmoid -> rescale x
# ----------------------------------------------------------------------------
def _se_kernel(x_ref, w1_ref, w2_ref, o_ref, *, inv_hw):
    # x_ref/o_ref: (bt, C, HWp)   w1_ref: (C, hidden) (= W1.T)
    # w2_ref     : (hidden, C)    (= W2.T)
    # Squeeze: per-channel spatial mean.  HW pad lanes are zero, so the sum
    # times the *true* 1/HW is the exact mean.
    s = jnp.sum(x_ref[...].astype(jnp.float32), axis=-1) * inv_hw       # (bt, C)

    # Excitation MLP (bias-free fc1 -> ReLU -> fc2 -> sigmoid), f32 accum.
    y1 = jnp.maximum(
        jnp.dot(s, w1_ref[...], preferred_element_type=jnp.float32), 0.0)   # (bt, h)
    y = jax.nn.sigmoid(
        jnp.dot(y1, w2_ref[...], preferred_element_type=jnp.float32))       # (bt, C)

    # Rescale.  Re-read x_ref (do NOT reuse the reduce's operand) so the
    # (bt, C, HWp) block is never a long-lived vreg value -> no spills; the
    # second read's vld slots are idle anyway in this DMA-bound kernel.
    o_ref[...] = (x_ref[...] * y[:, :, None].astype(x_ref.dtype)).astype(o_ref.dtype)


def _pick_batch_tile(b, per_image_bytes):
    """Images per grid step: ~1 MiB blocks, but keep >= 2 grid steps (v7x megacore)."""
    bt = max(1, _TARGET_BLOCK_BYTES // per_image_bytes)
    if b > 1:
        bt = min(bt, pl.cdiv(b, 2))
    return int(min(bt, b))


# ----------------------------------------------------------------------------
# Wrapper: SELayer.forward
# ----------------------------------------------------------------------------
def se_layer(x, w1, w2, *, in_place=False):
    """SELayer forward.

    x : (B, C, H, W) float32 (or bf16), NCHW — matches the PyTorch module.
    w1: (hidden, C)  nn.Linear(C, C//r, bias=False).weight layout.
    w2: (C, hidden)  nn.Linear(C//r, C, bias=False).weight layout.
    in_place: alias the output onto x's HBM buffer (input_output_aliases).
        Only a win when x's buffer is donatable (an intermediate activation,
        or a jit argument listed in donate_argnums); otherwise XLA inserts a
        defensive copy.
    """
    b, c, h, w = x.shape
    hidden = w1.shape[0]
    hw = h * w
    itemsize = jnp.dtype(x.dtype).itemsize

    # Lane-dense spatial axis: pad HW to a multiple of 128 so the dominant
    # (C, HW) loads/stores never lower to masked partial stores.
    hw_pad = 128 * pl.cdiv(hw, 128)
    xr = x.reshape(b, c, hw)
    if hw_pad != hw:
        xr = jnp.pad(xr, ((0, 0), (0, 0), (0, hw_pad - hw)))

    # Batch-tile selection + batch padding so bt divides the padded batch.
    per_image_bytes = c * hw_pad * itemsize
    bt = _pick_batch_tile(b, per_image_bytes)
    b_pad = bt * pl.cdiv(b, bt)
    if b_pad != b:
        xr = jnp.pad(xr, ((0, b_pad - b), (0, 0), (0, 0)))
    grid = (b_pad // bt,)

    # TODO(synk): if a single image's (C, HW) slab alone exceeds ~8 MiB (huge
    # BEV maps), also tile the HW axis with a two-pass mean; not needed here.

    # Explicit VMEM budget: 2x double-buffered input + 2x output blocks +
    # weights + headroom, clamped to every generation's safe range
    # (v5e scoped default 16 MiB; v7x physical VMEM only 64 MiB).
    block_bytes = bt * per_image_bytes
    weight_bytes = int((w1.size + w2.size) * jnp.dtype(w1.dtype).itemsize)
    vmem_need = 4 * block_bytes + 4 * weight_bytes + (2 << 20)
    vmem_limit = int(min(max(vmem_need, _MIN_VMEM_LIMIT), _MAX_VMEM_LIMIT))

    w1_t = w1.T                      # (C, hidden)
    w2_t = w2.T                      # (hidden, C)

    flops = b * (2 * c * hw + 4 * c * hidden + c * hw + 2 * c)
    transcendentals = b * c          # one sigmoid per channel
    bytes_accessed = int(itemsize * 2 * b * c * hw + 2 * 4 * c * hidden)

    out = pl.pallas_call(
        functools.partial(_se_kernel, inv_hw=1.0 / hw),
        out_shape=jax.ShapeDtypeStruct((b_pad, c, hw_pad), x.dtype),
        grid_spec=pltpu.PrefetchScalarGridSpec(
            num_scalar_prefetch=0,
            grid=grid,
            in_specs=[
                pl.BlockSpec((bt, c, hw_pad), lambda i: (i, 0, 0)),
                pl.BlockSpec((c, hidden), lambda i: (0, 0)),
                pl.BlockSpec((hidden, c), lambda i: (0, 0)),
            ],
            out_specs=pl.BlockSpec((bt, c, hw_pad), lambda i: (i, 0, 0)),
        ),
        compiler_params=pltpu.CompilerParams(
            dimension_semantics=("parallel",),
            vmem_limit_bytes=vmem_limit),
        cost_estimate=pl.CostEstimate(
            flops=flops,
            transcendentals=transcendentals,
            bytes_accessed=bytes_accessed),
        input_output_aliases=({0: 0} if in_place else {}),
    )(xr, w1_t, w2_t)

    out = out[:b, :, :hw]
    return out.reshape(b, c, h, w)


if __name__ == "__main__":
    key = jax.random.PRNGKey(0)
    B, C, H, W = 2, 64, 16, 16        # NCHW, C >= reduction
    reduction = 16
    hidden = C // reduction           # = 4

    kx, k1, k2 = jax.random.split(key, 3)
    x = jax.random.normal(kx, (B, C, H, W), jnp.float32)
    # PyTorch nn.Linear weight layout: (out_features, in_features), bias=False.
    w1 = jax.random.normal(k1, (hidden, C), jnp.float32) * (1.0 / C ** 0.5)
    w2 = jax.random.normal(k2, (C, hidden), jnp.float32) * (1.0 / hidden ** 0.5)

    # Pure-JAX reference (exact SELayer semantics), computed BEFORE the
    # donating kernel call since x's buffer is donated below.
    y_ref = jnp.mean(x, axis=(2, 3))                       # (B, C)
    y_ref = jnp.maximum(y_ref @ w1.T, 0.0)                 # (B, hidden)
    y_ref = jax.nn.sigmoid(y_ref @ w2.T)                   # (B, C)
    ref = jax.block_until_ready(x * y_ref[:, :, None, None])
    x_shape = x.shape

    # In-place SE: output aliases x's (donated) HBM buffer.
    fwd = jax.jit(functools.partial(se_layer, in_place=True), donate_argnums=(0,))
    out = jax.block_until_ready(fwd(x, w1, w2))

    assert out.shape == x_shape
    assert bool(jnp.all(jnp.isfinite(out)))
    err = float(jnp.max(jnp.abs(out - ref)))
    assert bool(jnp.allclose(out, ref, rtol=1e-5, atol=1e-5)), err
    print("KERNEL_OK")
</pallas_src>

<mosaic_0001>
module attributes {stable_mosaic.version = 11 : i64} {
  func.func @_se_kernel(%arg0: i32, %arg1: memref<1x64x256xf32, #tpu.memory_space<vmem>>, %arg2: memref<64x4xf32, #tpu.memory_space<vmem>>, %arg3: memref<4x64xf32, #tpu.memory_space<vmem>>, %arg4: memref<1x64x256xf32, #tpu.memory_space<vmem>>) attributes {dimension_semantics = [#tpu.dimension_semantics<parallel>], iteration_bounds = array<i64: 2>, scalar_prefetch = 0 : i64, scratch_operands = 0 : i64, tpu.core_type = #tpu.core_type<tc>, window_params = [{transform_indices = @transform_0, window_bounds = array<i64: 1, 64, 256>}, {pipeline_mode = #tpu.pipeline_mode<synchronous>, transform_indices = @transform_1, window_bounds = array<i64: 64, 4>}, {pipeline_mode = #tpu.pipeline_mode<synchronous>, transform_indices = @transform_2, window_bounds = array<i64: 4, 64>}, {transform_indices = @transform_3, window_bounds = array<i64: 1, 64, 256>}]} {
    %c0 = arith.constant 0 : index
    %c0_0 = arith.constant 0 : index
    %c0_1 = arith.constant 0 : index
    %0 = vector.load %arg1[%c0, %c0_0, %c0_1] : memref<1x64x256xf32, #tpu.memory_space<vmem>>, vector<1x64x256xf32>
    %cst = arith.constant dense<0.000000e+00> : vector<1x64xf32>
    %1 = vector.multi_reduction <add>, %0, %cst [2] : vector<1x64x256xf32> to vector<1x64xf32>
    %cst_2 = arith.constant 3.906250e-03 : f32
    %2 = vector.broadcast %cst_2 : f32 to vector<1x64xf32>
    %3 = arith.mulf %1, %2 : vector<1x64xf32>
    %c0_3 = arith.constant 0 : index
    %c0_4 = arith.constant 0 : index
    %4 = vector.load %arg2[%c0_3, %c0_4] : memref<64x4xf32, #tpu.memory_space<vmem>>, vector<64x4xf32>
    %cst_5 = arith.constant dense<0.000000e+00> : vector<1x4xf32>
    %5 = tpu.matmul %3, %4, %cst_5 {dimension_numbers = #tpu.dot_dimension_numbers<[1], [0], [0], [1], [0, 0, 1, 1], [], []>} : vector<1x64xf32>, vector<64x4xf32>, vector<1x4xf32> -> vector<1x4xf32>
    %cst_6 = arith.constant 0.000000e+00 : f32
    %6 = vector.broadcast %cst_6 : f32 to vector<1x4xf32>
    %7 = arith.maximumf %5, %6 : vector<1x4xf32>
    %c0_7 = arith.constant 0 : index
    %c0_8 = arith.constant 0 : index
    %8 = vector.load %arg3[%c0_7, %c0_8] : memref<4x64xf32, #tpu.memory_space<vmem>>, vector<4x64xf32>
    %cst_9 = arith.constant dense<0.000000e+00> : vector<1x64xf32>
    %9 = tpu.matmul %7, %8, %cst_9 {dimension_numbers = #tpu.dot_dimension_numbers<[1], [0], [0], [1], [0, 0, 1, 1], [], []>} : vector<1x4xf32>, vector<4x64xf32>, vector<1x64xf32> -> vector<1x64xf32>
    %10 = arith.negf %9 : vector<1x64xf32>
    %11 = math.exp %10 : vector<1x64xf32>
    %cst_10 = arith.constant 1.000000e+00 : f32
    %12 = vector.broadcast %cst_10 : f32 to vector<1x64xf32>
    %13 = arith.addf %12, %11 : vector<1x64xf32>
    %14 = arith.divf %12, %13 : vector<1x64xf32>
    %c0_11 = arith.constant 0 : index
    %c0_12 = arith.constant 0 : index
    %c0_13 = arith.constant 0 : index
    %15 = vector.load %arg1[%c0_11, %c0_12, %c0_13] : memref<1x64x256xf32, #tpu.memory_space<vmem>>, vector<1x64x256xf32>
    %16 = vector.shape_cast %14 : vector<1x64xf32> to vector<1x64x1xf32>
    %17 = vector.broadcast %16 : vector<1x64x1xf32> to vector<1x64x256xf32>
    %18 = arith.mulf %15, %17 : vector<1x64x256xf32>
    %c0_14 = arith.constant 0 : index
    %c0_15 = arith.constant 0 : index
    %c0_16 = arith.constant 0 : index
    %19 = vector.load %arg4[%c0_14, %c0_15, %c0_16] : memref<1x64x256xf32, #tpu.memory_space<vmem>>, vector<1x64x256xf32>
    tpu.vector_store %arg4[%c0_14, %c0_15, %c0_16], %18 {strides = array<i32>} : memref<1x64x256xf32, #tpu.memory_space<vmem>>, vector<1x64x256xf32>,
    return
  }
  func.func @transform_0(%arg0: i32) -> (i32, i32, i32) {
    %c0_i32 = arith.constant 0 : i32
    %c0_i32_0 = arith.constant 0 : i32
    %c0_i32_1 = arith.constant 0 : i32
    return %arg0, %c0_i32, %c0_i32_0 : i32, i32, i32
  }
  func.func @transform_1(%arg0: i32) -> (i32, i32) {
    %c0_i32 = arith.constant 0 : i32
    %c0_i32_0 = arith.constant 0 : i32
    %c0_i32_1 = arith.constant 0 : i32
    return %c0_i32, %c0_i32_0 : i32, i32
  }
  func.func @transform_2(%arg0: i32) -> (i32, i32) {
    %c0_i32 = arith.constant 0 : i32
    %c0_i32_0 = arith.constant 0 : i32
    %c0_i32_1 = arith.constant 0 : i32
    return %c0_i32, %c0_i32_0 : i32, i32
  }
  func.func @transform_3(%arg0: i32) -> (i32, i32, i32) {
    %c0_i32 = arith.constant 0 : i32
    %c0_i32_0 = arith.constant 0 : i32
    %c0_i32_1 = arith.constant 0 : i32
    return %arg0, %c0_i32, %c0_i32_0 : i32, i32, i32
  }
}

</mosaic_0001>

<bundles_post_ra>
// kernel: se_layer.1
= control target key start
LH: loop header
LB: loop body
LE: loop exit
PB: predicated region body
PF: predicated region fallthrough
CT: control target
= control target key end

     0   :  { %s667_s12 = smov 0   ;;  %s812_s0 = inlined_call_operand.vmem [shape: f32[2,64,256], index: 0, kind: input, shape index: {}, may-alias: {0,3}]   ;;  %s813_s1 = inlined_call_operand.vmem [shape: f32[64,4], index: 1, kind: input, shape index: {}]   ;;  %s814_s2 = inlined_call_operand.vmem [shape: f32[4,64], index: 2, kind: input, shape index: {}]   ;;  %s815_s3 = inlined_call_operand.vmem [shape: f32[2,64,256], index: 3, kind: output, shape index: {}, may-alias: {0,3}]  }
   0x1 LB: > { %s571_s13 = sadd.s32 4294967295, %s643_s12   ;;  %p575_p0 = scmp.ge.s32.totalorder %s643_s12, 1  ;;  %s643_s12 = sphi %s667_s12, %s13_s12  }
   0x2   : > { %p137_p1 = scmp.lt.s32.totalorder %s643_s12, 3 }
   0x4   : > { %p138_p2 = pnand %p575_p0, %p137_p1 }
   0x5   : > { %p161_p3 = scmp.lt.s32.totalorder (!%p138_p2), %s571_s13, 1 }
   0x6   : > { %141 = sbr.rel (%p138_p2) target bundleno = 729 (0x2d9), region = 32 }
   0xb   : > { %s817_s13 = smov (!%p161_p3, %s571_s13), 1  ;;  %v645_v24 = vmov 0.0   ;;  %v226_v25 = vld [vmem:[%s813_s1 + $0x38] sm:$0xff]  ;;  %v225_v26 = vld [vmem:[%s813_s1 + $0x30] sm:$0xff]  ;;  %v224_v27 = vld [vmem:[%s813_s1 + $0x28] sm:$0xff]  ;;  %vm646_vm0 = vmmov 0   ;;  %v235_v33 = vlaneseq }
   0xc   : > { %s586_s14 = sshll.u32 %s817_s13, 7  ;;  %599 = vmatprep.subr.mxu0 %v645_v24  ;;  %618 = vmatprep.subr.mxu1 %v645_v24  ;;  %v223_v28 = vld [vmem:[%s813_s1 + $0x20] sm:$0xff]  ;;  %v222_v29 = vld [vmem:[%s813_s1 + $0x18] sm:$0xff]  ;;  %v221_v30 = vld [vmem:[%s813_s1 + $0x10] sm:$0xff]  ;;  %vm246_vm1 = vcmask 130112   ;;  %vm253_vm2 = vcmask 195712  }
   0xd   : > { %s165_s17 = scalar_lea.vmem %s812_s0, %s586_s14  ;;  %600 = vmatpush3.msra.mxu0 %v226_v25  ;;  %v220_v31 = vld [vmem:[%s813_s1 + $0x8] sm:$0xff]  ;;  %v219_v32 = vld [vmem:[%s813_s1] sm:$0xff]  ;;  %615 = vmatprep.mubr.msk.f32.mxu0 %vm646_vm0, %v645_v24  ;;  %v236_v34 = vand.u32 127, %v235_v33  ;;  %v755_v35 = vshrl.u32 %v235_v33, 7  ;;  %vm260_vm3 = vcmask 261312   ;;  %vm267_vm4 = vcmask 326912   ;;  %s775_s11 = scalar_lea.vmem %s815_s3, %s586_s14 }
   0xe   : > { %v683_v0 = vld [vmem:[%s165_s17] sm:$0xff]  ;;  %v685_v1 = vld [vmem:[%s165_s17 + $0x8] sm:$0xff]  ;;  %v693_v5 = vld [vmem:[%s165_s17 + $0x10] sm:$0xff]  ;;  %601 = vmatprep.subr.mxu0 %v645_v24  ;;  %620 = vmatprep.mubr.msk.f32.mxu1 %vm646_vm0, %v645_v24  ;;  %vm274_vm5 = vcmask 392512   ;;  %vm281_vm6 = vcmask 458112   ;;  %vm288_vm7 = vcmask 523712  }
   0xf   : > { %v687_v2 = vld [vmem:[%s165_s17 + $0x20] sm:$0xff]  ;;  %v187_v3 = vadd.f32 %v685_v1, %v683_v0  ;;  %v691_v4 = vld [vmem:[%s165_s17 + $0x28] sm:$0xff]  ;;  %v695_v6 = vld [vmem:[%s165_s17 + $0x18] sm:$0xff]  ;;  %602 = vmatpush3.msra.mxu0 %v225_v26  ;;  %v241_v36 = vadd.s32 4294967288, %v236_v34  ;;  %v248_v38 = vadd.s32 4294967280, %v236_v34  ;;  %v255_v39 = vadd.s32 4294967272, %v236_v34 }
  0x10   : > { %v193_v7 = vadd.f32 %v691_v4, %v687_v2  ;;  %v699_v8 = vld [vmem:[%s165_s17 + $0x30] sm:$0xff]  ;;  %v701_v9 = vld [vmem:[%s165_s17 + $0x38] sm:$0xff]  ;;  %v190_v10 = vadd.f32 %v695_v6, %v693_v5  ;;  %v707_v12 = vld [vmem:[%s165_s17 + $0x40] sm:$0xff]  ;;  %603 = vmatprep.subr.mxu0 %v645_v24  ;;  %v239_v41 = vsub.s32 %v236_v34, %v755_v35  ;;  %v262_v44 = vadd.s32 4294967264, %v236_v34 }
  0x11   : > { %188 = vadd.xlane.f32.xlu0 %v187_v3  ;;  %v196_v11 = vadd.f32 %v701_v9, %v699_v8  ;;  %v709_v13 = vld [vmem:[%s165_s17 + $0x48] sm:$0xff]  ;;  %v711_v14 = vld [vmem:[%s165_s17 + $0x50] sm:$0xff]  ;;  %v713_v15 = vld [vmem:[%s165_s17 + $0x58] sm:$0xff]  ;;  %604 = vmatpush3.msra.mxu0 %v224_v27  ;;  %v244_v43 = vsub.s32 %v241_v36, %v755_v35  ;;  %v251_v45 = vsub.s32 %v248_v38, %v755_v35  ;;  %v269_v49 = vadd.s32 4294967256, %v236_v34 }
  0x12   : > { %194 = vadd.xlane.f32.xlu1 %v193_v7  ;;  %v199_v16 = vadd.f32 %v709_v13, %v707_v12  ;;  %v202_v17 = vadd.f32 %v713_v15, %v711_v14  ;;  %v719_v18 = vld [vmem:[%s165_s17 + $0x60] sm:$0xff]  ;;  %v721_v19 = vld [vmem:[%s165_s17 + $0x68] sm:$0xff]  ;;  %v723_v20 = vld [vmem:[%s165_s17 + $0x70] sm:$0xff]  ;;  %605 = vmatprep.subr.mxu0 %v645_v24  ;;  %v258_v48 = vsub.s32 %v255_v39, %v755_v35  ;;  %v276_v56 = vadd.s32 4294967248, %v236_v34 }
  0x13   : > { %v725_v21 = vld [vmem:[%s165_s17 + $0x78] sm:$0xff]  ;;  %v205_v22 = vadd.f32 %v721_v19, %v719_v18  ;;  %606 = vmatpush3.msra.mxu0 %v223_v28  ;;  %v265_v55 = vsub.s32 %v262_v44, %v755_v35  ;;  %v272_v60 = vsub.s32 %v269_v49, %v755_v35  ;;  %v283_v61 = vadd.s32 4294967240, %v236_v34  ;;  %v364_v34 = vld [vmem:[%s814_s2] sm:$0xf] }
  0x14   : > { %v208_v23 = vadd.f32 %v725_v21, %v723_v20  ;;  %607 = vmatprep.subr.mxu0 %v645_v24  ;;  %vm290_vm8 = vcmask 523264   ;;  %vm369_vm9 = vcmask 1043456   ;;  %vm365_vm10 = vcmask 31744  }
  0x15   : > { %191 = vadd.xlane.f32.xlu0 %v190_v10  ;;  %608 = vmatpush3.msra.mxu0 %v222_v29  ;;  %v451_v44 = vsub.s32 0, %v755_v35 }
  0x16   : > { %197 = vadd.xlane.f32.xlu1 %v196_v11  ;;  %609 = vmatprep.subr.mxu0 %v645_v24 }
  0x17   : > { %610 = vmatpush3.msra.mxu0 %v221_v30  ;;  %619 = vmatpush3.msk.msra.mxu1 %vm369_vm9, %v364_v34 }
  0x18   : > { %611 = vmatprep.subr.mxu0 %v645_v24 }
  0x19   : > { %200 = vadd.xlane.f32.xlu0 %v199_v16  ;;  %612 = vmatpush3.msra.mxu0 %v220_v31 }
  0x1a   : > { %203 = vadd.xlane.f32.xlu1 %v202_v17  ;;  %613 = vmatprep.subr.mxu0 %v645_v24  ;;  %v279_v17 = vsub.s32 %v276_v56, %v755_v35  ;;  %v286_v24 = vsub.s32 %v283_v61, %v755_v35 }
  0x1b   : > { %614 = vmatpush3.msra.mxu0 %v219_v32 }
  0x1d   : > { %206 = vadd.xlane.f32.xlu0 %v205_v22 }
  0x1e   : > { %209 = vadd.xlane.f32.xlu1 %v208_v23 }
  0x9a   : > { %v189_v37 = vpop.xlane.xlu0 %188 }
  0x9b   : > { %v195_v40 = vpop.xlane.xlu1 %194  ;;  %v211_v42 = vmul.f32 0.00390625, %v189_v37 }
  0x9c   : > { %v213_v46 = vmul.f32 0.00390625, %v195_v40 }
  0x9d   : > { %v240_v53 = vrot.slane %v211_v42, %v239_v41 }
  0x9e   : > { %v192_v47 = vpop.xlane.xlu0 %191  ;;  %v252_v57 = vrot.slane %v213_v46, %v251_v45 }
  0x9f   : > { %v212_v50 = vmul.f32 0.00390625, %v192_v47  ;;  %v198_v51 = vpop.xlane.xlu1 %197 }
  0xa0   : > { %v214_v52 = vmul.f32 0.00390625, %v198_v51 }
  0xa1   : > { %v245_v54 = vrot.slane %v212_v50, %v244_v43 }
  0xa2   : > { %v259_v58 = vrot.slane %v214_v52, %v258_v48  ;;  %v201_v59 = vpop.xlane.xlu0 %200 }
  0xa3   : > { %v247_v62 = vsel %vm246_vm1, %v245_v54, %v240_v53  ;;  %v215_v63 = vmul.f32 0.00390625, %v201_v59  ;;  %v204_v3 = vpop.xlane.xlu1 %203 }
  0xa4   : > { %v254_v7 = vsel %vm253_vm2, %v252_v57, %v247_v62  ;;  %v216_v10 = vmul.f32 0.00390625, %v204_v3 }
  0xa5   : > { %v261_v11 = vsel %vm260_vm3, %v259_v58, %v254_v7  ;;  %v266_v16 = vrot.slane %v215_v63, %v265_v55 }
  0xa6   : > { %v273_v22 = vrot.slane %v216_v10, %v272_v60  ;;  %v207_v23 = vpop.xlane.xlu0 %206 }
  0xa7   : > { %v268_v25 = vsel %vm267_vm4, %v266_v16, %v261_v11  ;;  %v217_v26 = vmul.f32 0.00390625, %v207_v23  ;;  %v210_v27 = vpop.xlane.xlu1 %209 }
  0xa8   : > { %v218_v28 = vmul.f32 0.00390625, %v210_v27  ;;  %v275_v30 = vsel %vm274_vm5, %v273_v22, %v268_v25 }
  0xa9   : > { %v280_v29 = vrot.slane %v217_v26, %v279_v17 }
  0xaa   : > { %v287_v31 = vrot.slane %v218_v28, %v286_v24 }
  0xab   : > { %v282_v32 = vsel %vm281_vm6, %v280_v29, %v275_v30 }
  0xac   : > { %v289_v33 = vsel %vm288_vm7, %v287_v31, %v282_v32 }
  0xad   : > { %616 = vmatmul.mubr.msk.f32.vlgmr.msra.gmra.mxu0 %vm290_vm8, %v289_v33 }
 0x16d   : > { %v359_v36 = vpop.f32.mrf.mxu0 }
 0x16e   : > { %v363_v37 = vmax.f32 %v359_v36, 0.0 }
 0x16f   : > { %v617_v38 = vpop.f32.mrf.mxu0 }
 0x170   : > { %621 = vmatmul.mubr.msk.f32.vlgmr.msra.gmra.mxu1 %vm365_vm10, %v363_v37 }
 0x230   : > { %v439_v39 = vpop.f32.mrf.mxu1 }
 0x231   : > { %v583_v40 = vmul.f32 -1.442695, %v439_v39 }
 0x232   : > { %v622_v41 = vpop.f32.mrf.mxu1 }
 0x233   : > { %633 = vpow2.f32 %v583_v40 }
 0x240   : > { %v634_v42 = vpop.eup %633 }
 0x241   : > { %v446_v43 = vadd.f32 1.0, %v634_v42 }
 0x243   : > { %635 = vrcp.f32 %v446_v43 }
 0x250   : > { %v636_v45 = vpop.eup %635 }
 0x251   : > { %v452_v46 = vrot.slane %v636_v45, %v451_v44 }
 0x253   : > { %458 = vbcast.lane.b32.xlu1 %v452_v46, 264  ;;  %454 = vbcast.lane.b32.xlu0 %v452_v46, 256 }
 0x257   : > { %462 = vbcast.lane.b32.xlu1 %v452_v46, 272  ;;  %470 = vbcast.lane.b32.xlu0 %v452_v46, 288 }
 0x25b   : > { %466 = vbcast.lane.b32.xlu1 %v452_v46, 280  ;;  %478 = vbcast.lane.b32.xlu0 %v452_v46, 304 }
 0x25f   : > { %474 = vbcast.lane.b32.xlu1 %v452_v46, 296 }
 0x263   : > { %482 = vbcast.lane.b32.xlu1 %v452_v46, 312 }
 0x2c5   : > { %v459_v35 = vpop.permute.xlu1 %458  ;;  %v455_v47 = vpop.permute.xlu0 %454 }
 0x2c6   : > { %v486_v48 = vmul.f32 %v459_v35, %v693_v5  ;;  %v487_v49 = vmul.f32 %v459_v35, %v695_v6  ;;  %v484_v50 = vmul.f32 %v455_v47, %v683_v0  ;;  %v485_v51 = vmul.f32 %v455_v47, %v685_v1 }
 0x2c8   : > { %502 = vst [vmem:[%s775_s11 + $0x10] sm:$0xff] %v486_v48  ;;  %503 = vst [vmem:[%s775_s11 + $0x18] sm:$0xff] %v487_v49 }
 0x2c9   : > { %500 = vst [vmem:[%s775_s11] sm:$0xff] %v484_v50  ;;  %501 = vst [vmem:[%s775_s11 + $0x8] sm:$0xff] %v485_v51  ;;  %v463_v52 = vpop.permute.xlu1 %462  ;;  %v471_v53 = vpop.permute.xlu0 %470 }
 0x2ca   : > { %v488_v54 = vmul.f32 %v463_v52, %v687_v2  ;;  %v489_v5 = vmul.f32 %v463_v52, %v691_v4  ;;  %v492_v6 = vmul.f32 %v471_v53, %v707_v12  ;;  %v493_v0 = vmul.f32 %v471_v53, %v709_v13 }
 0x2cc   : > { %504 = vst [vmem:[%s775_s11 + $0x20] sm:$0xff] %v488_v54  ;;  %505 = vst [vmem:[%s775_s11 + $0x28] sm:$0xff] %v489_v5 }
 0x2cd   : > { %508 = vst [vmem:[%s775_s11 + $0x40] sm:$0xff] %v492_v6  ;;  %509 = vst [vmem:[%s775_s11 + $0x48] sm:$0xff] %v493_v0  ;;  %v467_v1 = vpop.permute.xlu1 %466  ;;  %v479_v55 = vpop.permute.xlu0 %478 }
 0x2ce   : > { %v490_v56 = vmul.f32 %v467_v1, %v699_v8  ;;  %v491_v2 = vmul.f32 %v467_v1, %v701_v9  ;;  %v496_v4 = vmul.f32 %v479_v55, %v719_v18  ;;  %v497_v12 = vmul.f32 %v479_v55, %v721_v19 }
 0x2d0   : > { %506 = vst [vmem:[%s775_s11 + $0x30] sm:$0xff] %v490_v56  ;;  %507 = vst [vmem:[%s775_s11 + $0x38] sm:$0xff] %v491_v2 }
 0x2d1   : > { %512 = vst [vmem:[%s775_s11 + $0x60] sm:$0xff] %v496_v4  ;;  %513 = vst [vmem:[%s775_s11 + $0x68] sm:$0xff] %v497_v12  ;;  %v475_v13 = vpop.permute.xlu1 %474 }
 0x2d2   : > { %v494_v57 = vmul.f32 %v475_v13, %v711_v14  ;;  %v495_v58 = vmul.f32 %v475_v13, %v713_v15 }
 0x2d4   : > { %510 = vst [vmem:[%s775_s11 + $0x50] sm:$0xff] %v494_v57  ;;  %511 = vst [vmem:[%s775_s11 + $0x58] sm:$0xff] %v495_v58 }
 0x2d5   : > { %v483_v8 = vpop.permute.xlu1 %482 }
 0x2d6   : > { %v498_v59 = vmul.f32 %v483_v8, %v723_v20  ;;  %v499_v9 = vmul.f32 %v483_v8, %v725_v21 }
 0x2d8   : > { %514 = vst [vmem:[%s775_s11 + $0x70] sm:$0xff] %v498_v59  ;;  %515 = vst [vmem:[%s775_s11 + $0x78] sm:$0xff] %v499_v9 }
 0x2d9 PF: > { %s13_s12 = sadd.s32 1, %s643_s12  }
 0x2da   : > { %p10_p4 = scmp.ge.s32.totalorder %s13_s12, 4  }
 0x2dc   :  { %12 = sbr.rel (!%p10_p4) target bundleno = 1 (0x1), region = 62 }

</bundles_post_ra>
